<compile_context>
chip_gen: v6e
topology: v6e:2x2x1
jax: 0.10.0
libtpu: 0.0.40
codegen_flags: <defaults>
</compile_context>

<pallas_src>
import functools

import jax
import jax.numpy as jnp
from jax import lax
from jax.experimental import pallas as pl
from jax.experimental.pallas import tpu as pltpu


def _nt_xent_kernel(zq_ref, zk_ref, lk_ref, denom_ref, num_ref, *,
                    inv_temperature, tile_k, exp_dtype):
    """Grid step (qi, ki): TQ query rows vs TK key rows.

    Accumulates directly into the resident output blocks (reset at ki == 0):
      denom_ref (TQ, 128)  : lane-slab partial sums of exp((sim - 1) / tau)
      num_ref   (TQ, Cpad) : sum_k sim[q, k] * labels[k, :]
    Diagonal removal, positive_sum, log / divide / mean happen in the wrapper.
    """
    ki = pl.program_id(1)

    @pl.when(ki == 0)
    def _():
        denom_ref[...] = jnp.zeros_like(denom_ref)
        num_ref[...] = jnp.zeros_like(num_ref)

    # Cosine similarities (unscaled): contract dim 1 vs dim 1 -> no key transpose.
    sim = lax.dot_general(
        zq_ref[...], zk_ref[...],
        dimension_numbers=(((1,), (1,)), ((), ())),
        preferred_element_type=jnp.float32)                        # (TQ, TK) f32

    # exp(sim/tau - 1/tau): 1/tau applied here in f32 (safer than folding it
    # into the bf16 operands); the analytic max (sim <= 1 for normalized rows)
    # is subtracted so the running sum never overflows at small temperatures.
    arg = (sim - 1.0) * inv_temperature
    e = jnp.exp(arg.astype(exp_dtype)).astype(jnp.float32)         # EUP

    # Deferred reduction: VPU tree-sum of tile-aligned 128-lane slabs into the
    # lane-dense accumulator.  No per-step cross-lane XLU reduce.
    part = e[:, 0:128]
    for t in range(1, tile_k // 128):
        part = part + e[:, t * 128:(t + 1) * 128]
    denom_ref[...] += part

    # Numerator: contract sim against the key labels on the MXU.  The wrapper
    # later forms sum_c labels_q[c] * num[q, c] == sum_k sim[q, k] * pos[q, k].
    num_ref[...] += jnp.dot(sim.astype(jnp.bfloat16), lk_ref[...],
                            preferred_element_type=jnp.float32)    # (TQ, Cpad)


def nt_xent_loss(z_i, z_j, dist_labels, *, temperature,
                 tile_q=512, tile_k=512,
                 mxu_dtype=jnp.bfloat16, exp_dtype=jnp.bfloat16):
    """NT_Xent.forward equivalent (world_size == 1).

    exp_dtype: bfloat16 on v6e/v7x (2x EUP throughput); use float32 on v5e.
    """
    # Glue (plain JAX): concatenation, normalization, padding, dtype prep.
    z = jnp.concatenate([z_i, z_j], axis=0).astype(jnp.float32)                     # (N, D)
    labels = jnp.concatenate([dist_labels, dist_labels], axis=0).astype(jnp.float32)  # (N, C)
    # TODO(synk): world_size > 1 (GatherLayer cross-device all-gather) not implemented.

    N, D = z.shape
    C = labels.shape[1]

    # Tile selection: big tiles to amortize per-step overhead, but keep >= 2
    # query tiles so the 'parallel' axis can feed both v7x TensorCores.
    tile_q = min(tile_q, N)
    tile_k = min(tile_k, N)
    while N % tile_q != 0 and tile_q > 128:
        tile_q //= 2
    while N % tile_k != 0 and tile_k > 128:
        tile_k //= 2
    while N // tile_q < 2 and tile_q > 128:
        tile_q //= 2
    assert N % tile_q == 0 and N % tile_k == 0, \
        "N = 2*batch must be divisible by the query/key tile sizes"
    assert tile_q % 8 == 0 and tile_k % 128 == 0, \
        "tile_q must be a multiple of 8 and tile_k a multiple of 128"

    inv_t = 1.0 / float(temperature)

    # Hoisted L2 normalization (torch.nn.functional.normalize semantics), in f32.
    zn = z / jnp.maximum(jnp.sqrt(jnp.sum(z * z, axis=1, keepdims=True)), 1e-12)

    # Zero-pad D and C up to lane-width multiples (zeros don't change any dot
    # product); bf16 operands for the MXU (one-hot/binary labels are exact).
    d_pad = ((D + 127) // 128) * 128
    c_pad = ((C + 127) // 128) * 128
    zp = jnp.pad(zn, ((0, 0), (0, d_pad - D))).astype(mxu_dtype)          # (N, Dpad)
    lp = jnp.pad(labels, ((0, 0), (0, c_pad - C))).astype(jnp.bfloat16)   # (N, Cpad)

    n_q = N // tile_q
    n_k = N // tile_k

    kernel = functools.partial(
        _nt_xent_kernel,
        inv_temperature=inv_t,
        tile_k=tile_k,
        exp_dtype=exp_dtype,
    )

    cost = pl.CostEstimate(
        flops=2 * N * N * (d_pad + c_pad),
        transcendentals=N * N,
        bytes_accessed=(n_q * N * (d_pad + c_pad) * 2      # streamed key rows/labels
                        + N * d_pad * 2                     # query rows
                        + N * (128 + c_pad) * 4),           # outputs
    )

    denom_acc, num_acc = pl.pallas_call(
        kernel,
        out_shape=(jax.ShapeDtypeStruct((N, 128), jnp.float32),
                   jax.ShapeDtypeStruct((N, c_pad), jnp.float32)),
        grid_spec=pltpu.PrefetchScalarGridSpec(
            num_scalar_prefetch=0,
            grid=(n_q, n_k),
            in_specs=[
                pl.BlockSpec((tile_q, d_pad), lambda qi, ki: (qi, 0)),   # query rows (bf16)
                pl.BlockSpec((tile_k, d_pad), lambda qi, ki: (ki, 0)),   # key rows   (bf16)
                pl.BlockSpec((tile_k, c_pad), lambda qi, ki: (ki, 0)),   # key labels (bf16)
            ],
            out_specs=[
                pl.BlockSpec((tile_q, 128), lambda qi, ki: (qi, 0)),     # denom slabs (f32)
                pl.BlockSpec((tile_q, c_pad), lambda qi, ki: (qi, 0)),   # num acc     (f32)
            ],
        ),
        compiler_params=pltpu.CompilerParams(
            dimension_semantics=("parallel", "arbitrary"),
            vmem_limit_bytes=32 * 1024 * 1024,   # explicit budget; safe on v5e/v6e/v7x
        ),
        cost_estimate=cost,
    )(zp, zp, lp)

    # Cheap O(N) finalization in plain JAX (all cross-lane reductions deferred here).
    labnorm_sq = jnp.sum(labels * labels, axis=1)                        # (N,)
    psum = labels @ jnp.sum(labels, axis=0) - labnorm_sq                 # positives per row (no diag)
    denom = jnp.sum(denom_acc, axis=1) - 1.0                             # diag exp((1-1)/tau)=1 removed
    num = jnp.sum(labels * num_acc[:, :C], axis=1)                       # sum_k sim*pos (incl. diag)
    num = inv_t * (num - labnorm_sq)                                     # diag sim_ii=1 removed, scaled
    # log(sum_{k!=i} exp(sim/tau)) = log(denom) + 1/tau  (shift restored).
    # NOTE: rows whose class has no other member in the batch (psum == 0)
    # produce NaN here — same behavior as the PyTorch reference.
    row_loss = (jnp.log(denom) + inv_t) - num / psum
    return jnp.mean(row_loss)


if __name__ == "__main__":
    # Small deterministic example (world_size = 1) that still exercises a
    # multi-tile (2 x 2) grid: two parallel query tiles, two key (reduction) steps.
    B, D, C = 128, 64, 8          # per-view batch, embedding dim, #classes -> N = 256
    temperature = 0.5

    key = jax.random.PRNGKey(0)
    k1, k2 = jax.random.split(key)
    z_i = jax.random.normal(k1, (B, D), dtype=jnp.float32)
    z_j = jax.random.normal(k2, (B, D), dtype=jnp.float32)
    # one-hot class labels; each class appears many times so every row has at
    # least one positive besides itself (required by the loss definition).
    class_ids = jnp.arange(B) % C
    dist_labels = jax.nn.one_hot(class_ids, C, dtype=jnp.float32)

    loss = nt_xent_loss(z_i, z_j, dist_labels, temperature=temperature, tile_k=128)
    loss = jax.block_until_ready(loss)

    # Pure-JAX f32 reference (module semantics).
    z = jnp.concatenate([z_i, z_j], axis=0)
    lab = jnp.concatenate([dist_labels, dist_labels], axis=0)
    zn = z / jnp.maximum(jnp.linalg.norm(z, axis=1, keepdims=True), 1e-12)
    sim = (zn @ zn.T) / temperature
    N = 2 * B
    eye = jnp.eye(N, dtype=jnp.float32)
    pos = (lab @ lab.T) * (1.0 - eye)
    denom = jnp.sum(jnp.exp(sim) * (1.0 - eye), axis=1)
    ref = jnp.mean(jnp.log(denom) - jnp.sum(sim * pos, axis=1) / jnp.sum(pos, axis=1))

    # bf16 MXU operands / bf16 exp -> small numerical tolerance vs the f32 reference.
    assert jnp.allclose(loss, ref, rtol=2e-2, atol=2e-2), (loss, ref)
    print("KERNEL_OK")
</pallas_src>

<mosaic_0001>
module attributes {stable_mosaic.version = 11 : i64} {
  func.func @_nt_xent_kernel(%arg0: i32, %arg1: i32, %arg2: memref<128x128xbf16, #tpu.memory_space<vmem>>, %arg3: memref<128x128xbf16, #tpu.memory_space<vmem>>, %arg4: memref<128x128xbf16, #tpu.memory_space<vmem>>, %arg5: memref<128x128xf32, #tpu.memory_space<vmem>>, %arg6: memref<128x128xf32, #tpu.memory_space<vmem>>) attributes {dimension_semantics = [#tpu.dimension_semantics<parallel>, #tpu.dimension_semantics<arbitrary>], iteration_bounds = array<i64: 2, 2>, scalar_prefetch = 0 : i64, scratch_operands = 0 : i64, tpu.core_type = #tpu.core_type<tc>, window_params = [{transform_indices = @transform_0, window_bounds = array<i64: 128, 128>}, {transform_indices = @transform_1, window_bounds = array<i64: 128, 128>}, {transform_indices = @transform_2, window_bounds = array<i64: 128, 128>}, {transform_indices = @transform_3, window_bounds = array<i64: 128, 128>}, {transform_indices = @transform_4, window_bounds = array<i64: 128, 128>}]} {
    %c0_i32 = arith.constant 0 : i32
    %0 = arith.cmpi eq, %arg1, %c0_i32 : i32
    %1 = arith.extui %0 : i1 to i32
    %c0_i32_0 = arith.constant 0 : i32
    %2 = arith.cmpi ne, %1, %c0_i32_0 : i32
    scf.if %2 {
      %cst_17 = arith.constant 0.000000e+00 : f32
      %22 = vector.broadcast %cst_17 : f32 to vector<128x128xf32>
      %c0_18 = arith.constant 0 : index
      %c0_19 = arith.constant 0 : index
      %23 = vector.load %arg5[%c0_18, %c0_19] : memref<128x128xf32, #tpu.memory_space<vmem>>, vector<128x128xf32>
      tpu.vector_store %arg5[%c0_18, %c0_19], %22 {strides = array<i32>} : memref<128x128xf32, #tpu.memory_space<vmem>>, vector<128x128xf32>,
      %cst_20 = arith.constant 0.000000e+00 : f32
      %24 = vector.broadcast %cst_20 : f32 to vector<128x128xf32>
      %c0_21 = arith.constant 0 : index
      %c0_22 = arith.constant 0 : index
      %25 = vector.load %arg6[%c0_21, %c0_22] : memref<128x128xf32, #tpu.memory_space<vmem>>, vector<128x128xf32>
      tpu.vector_store %arg6[%c0_21, %c0_22], %24 {strides = array<i32>} : memref<128x128xf32, #tpu.memory_space<vmem>>, vector<128x128xf32>,
    } else {
    }
    %c0 = arith.constant 0 : index
    %c0_1 = arith.constant 0 : index
    %3 = vector.load %arg2[%c0, %c0_1] : memref<128x128xbf16, #tpu.memory_space<vmem>>, vector<128x128xbf16>
    %c0_2 = arith.constant 0 : index
    %c0_3 = arith.constant 0 : index
    %4 = vector.load %arg3[%c0_2, %c0_3] : memref<128x128xbf16, #tpu.memory_space<vmem>>, vector<128x128xbf16>
    %cst = arith.constant dense<0.000000e+00> : vector<128x128xf32>
    %5 = tpu.matmul %3, %4, %cst {dimension_numbers = #tpu.dot_dimension_numbers<[1], [1], [0], [0], [0, 0, 1, 0], [], []>} : vector<128x128xbf16>, vector<128x128xbf16>, vector<128x128xf32> -> vector<128x128xf32>
    %cst_4 = arith.constant 1.000000e+00 : f32
    %6 = vector.broadcast %cst_4 : f32 to vector<128x128xf32>
    %7 = arith.subf %5, %6 : vector<128x128xf32>
    %cst_5 = arith.constant 2.000000e+00 : f32
    %8 = vector.broadcast %cst_5 : f32 to vector<128x128xf32>
    %9 = arith.mulf %7, %8 : vector<128x128xf32>
    %10 = arith.truncf %9 : vector<128x128xf32> to vector<128x128xbf16>
    %11 = math.exp %10 : vector<128x128xbf16>
    %12 = arith.extf %11 : vector<128x128xbf16> to vector<128x128xf32>
    %c0_6 = arith.constant 0 : index
    %c0_7 = arith.constant 0 : index
    %13 = vector.load %arg5[%c0_6, %c0_7] : memref<128x128xf32, #tpu.memory_space<vmem>>, vector<128x128xf32>
    %14 = arith.addf %13, %12 : vector<128x128xf32>
    %c0_8 = arith.constant 0 : index
    %c0_9 = arith.constant 0 : index
    %15 = vector.load %arg5[%c0_8, %c0_9] : memref<128x128xf32, #tpu.memory_space<vmem>>, vector<128x128xf32>
    tpu.vector_store %arg5[%c0_8, %c0_9], %14 {strides = array<i32>} : memref<128x128xf32, #tpu.memory_space<vmem>>, vector<128x128xf32>,
    %c0_10 = arith.constant 0 : index
    %c0_11 = arith.constant 0 : index
    %16 = vector.load %arg6[%c0_10, %c0_11] : memref<128x128xf32, #tpu.memory_space<vmem>>, vector<128x128xf32>
    %17 = arith.truncf %5 : vector<128x128xf32> to vector<128x128xbf16>
    %c0_12 = arith.constant 0 : index
    %c0_13 = arith.constant 0 : index
    %18 = vector.load %arg4[%c0_12, %c0_13] : memref<128x128xbf16, #tpu.memory_space<vmem>>, vector<128x128xbf16>
    %cst_14 = arith.constant dense<0.000000e+00> : vector<128x128xf32>
    %19 = tpu.matmul %17, %18, %cst_14 {dimension_numbers = #tpu.dot_dimension_numbers<[1], [0], [0], [1], [0, 0, 1, 1], [], []>} : vector<128x128xbf16>, vector<128x128xbf16>, vector<128x128xf32> -> vector<128x128xf32>
    %20 = arith.addf %16, %19 : vector<128x128xf32>
    %c0_15 = arith.constant 0 : index
    %c0_16 = arith.constant 0 : index
    %21 = vector.load %arg6[%c0_15, %c0_16] : memref<128x128xf32, #tpu.memory_space<vmem>>, vector<128x128xf32>
    tpu.vector_store %arg6[%c0_15, %c0_16], %20 {strides = array<i32>} : memref<128x128xf32, #tpu.memory_space<vmem>>, vector<128x128xf32>,
    return
  }
  func.func @transform_0(%arg0: i32, %arg1: i32) -> (i32, i32) {
    %c0_i32 = arith.constant 0 : i32
    %c0_i32_0 = arith.constant 0 : i32
    return %arg0, %c0_i32 : i32, i32
  }
  func.func @transform_1(%arg0: i32, %arg1: i32) -> (i32, i32) {
    %c0_i32 = arith.constant 0 : i32
    %c0_i32_0 = arith.constant 0 : i32
    return %arg1, %c0_i32 : i32, i32
  }
  func.func @transform_2(%arg0: i32, %arg1: i32) -> (i32, i32) {
    %c0_i32 = arith.constant 0 : i32
    %c0_i32_0 = arith.constant 0 : i32
    return %arg1, %c0_i32 : i32, i32
  }
  func.func @transform_3(%arg0: i32, %arg1: i32) -> (i32, i32) {
    %c0_i32 = arith.constant 0 : i32
    %c0_i32_0 = arith.constant 0 : i32
    return %arg0, %c0_i32 : i32, i32
  }
  func.func @transform_4(%arg0: i32, %arg1: i32) -> (i32, i32) {
    %c0_i32 = arith.constant 0 : i32
    %c0_i32_0 = arith.constant 0 : i32
    return %arg0, %c0_i32 : i32, i32
  }
}

</mosaic_0001>

<bundles_post_ra>
// kernel: tpu_custom_call.1
= control target key start
LH: loop header
LB: loop body
LE: loop exit
PB: predicated region body
PF: predicated region fallthrough
CT: control target
= control target key end

     0   :  { %s2184_s0 = inlined_call_operand.hbm [shape: bf16[256,128], index: 0, kind: input, shape index: {}]   ;;  %s2185_s1 = inlined_call_operand.hbm [shape: bf16[256,128], index: 1, kind: input, shape index: {}]   ;;  %s2186_s2 = inlined_call_operand.hbm [shape: bf16[256,128], index: 2, kind: input, shape index: {}]   ;;  %s2187_s3 = inlined_call_operand.hbm [shape: f32[256,128], index: 3, kind: output, shape index: {0}]   ;;  %s2188_s4 = inlined_call_operand.hbm [shape: f32[256,128], index: 4, kind: output, shape index: {1}]  }
   0x1   :  { %2203 = sst [smem:[#allocation21_spill]] %s2185_s1 }
   0x2   :  { %2204 = sst [smem:[#allocation22_spill]] %s2186_s2 }
   0x3   :  { %2205 = sst [smem:[#allocation23_spill]] %s2187_s3 }
   0x4   :  { %2206 = sst [smem:[#allocation24_spill]] %s2188_s4 }
   0x5   :  { %10 = vsyncpa [#allocation3], 0 }
   0x6   :  { %12 = vsyncpa [#allocation3 + $0x1], 0 }
   0x7   :  { %13 = vsyncpa [#allocation6], 0 }
   0x8   :  { %15 = vsyncpa [#allocation6 + $0x1], 0 }
   0x9   :  { %16 = vsyncpa [#allocation4], 0 }
   0xa   :  { %18 = vsyncpa [#allocation4 + $0x1], 0 }
   0xb   :  { %19 = vsyncpa [#allocation10], 0 }
   0xc   :  { %21 = vsyncpa [#allocation10 + $0x1], 0  ;;  %s1728_s15 = smov 0   ;;  %s1730_s16 = smov 0  }
   0xd   :  { %s1732_s17 = smov 0   ;;  %s1734_s18 = smov 0  }
   0xe   :  { %s1736_s19 = smov 0   ;;  %s1738_s20 = smov 0  }
   0xf   :  { %s1740_s21 = smov 0   ;;  %s1742_s22 = smov 0  }
  0x10   :  { %s1744_s23 = smov 0   ;;  %s1746_s24 = smov 0  }
  0x11   :  { %s1748_s25 = smov 0  }
  0x12 LB: > { %2207 = sst [smem:[#allocation15_spill]] %s1659_s17  ;;  %s1782_s26 = sadd.s32 4294967295, %s1691_s25   ;;  %s1691_s25 = sphi %s1748_s25, %s27_s25   ;;  %s1687_s24 = sphi %s1746_s24, %s2245_s24   ;;  %s1683_s23 = sphi %s1744_s23, %s2238_s23   ;;  %s1679_s22 = sphi %s1742_s22, %s2244_s22   ;;  %s1675_s21 = sphi %s1740_s21, %s2237_s21   ;;  %s1671_s20 = sphi %s1738_s20, %s2243_s20   ;;  %s1667_s19 = sphi %s1736_s19, %s2242_s19   ;;  %s1663_s18 = sphi %s1734_s18, %s2241_s18   ;;  %s1659_s17 = sphi %s1732_s17, %s2236_s17   ;;  %s1655_s16 = sphi %s1730_s16, %s2240_s16   ;;  %s1651_s15 = sphi %s1728_s15, %s2239_s15  }
  0x13   : > { %2208 = sst [smem:[#allocation16_spill]] %s1663_s18  ;;  %s36_s27 = sadd.s32 1, %s1683_s23 }
  0x14   : > { %2209 = sst [smem:[#allocation17_spill]] %s1679_s22  ;;  %p1785_p0 = scmp.ge.s32.totalorder %s36_s27, 2 }
  0x15   : > { %2210 = sst [smem:[#allocation18_spill]] %s1683_s23  ;;  %p54_p1 = scmp.eq.s32.totalorder %s1691_s25, 0 }
  0x16   : > { %p60_p2 = scmp.eq.s32.totalorder %s1782_s26, 0  ;;  %s72_s29 = sadd.s32 1, %s1659_s17 }
  0x17   : > { %s2247_s27 = smov (%p1785_p0, %s36_s27), 0  ;;  %p79_p3 = scmp.ne.s32.totalorder %s1659_s17, %s1655_s16 }
  0x18   : > { %2212 = sst [smem:[#allocation19_spill]] %s2247_s27  ;;  %p85_p4 = scmp.ne.s32.totalorder %s1655_s16, %s1651_s15 }
  0x19   : > { %s69_s30 = ssub.s32 %s1683_s23, %s2247_s27  ;;  %p81_p6 = por %p79_p3, %p54_p1 }
  0x1a   : > { %p70_p5 = scmp.eq.s32.totalorder %s69_s30, 0  ;;  %p1805_p7 = por %p85_p4, %p60_p2 }
  0x1b   : > { %p2192_p8 = scmp.lt.s32.totalorder %s1691_s25, 4  ;;  %s208_s7 = sand.u32 1, %s1691_s25  }
  0x1c   : > { %s1811_s6 = scalar_select %p70_p5, %s1659_s17, %s72_s29  }
  0x1d   : > { %s210_s8 = sand.u32 1, %s1659_s17   ;;  %s1191_s10 = sshll.u32 %s1683_s23, 10 }
  0x1e   : > { %2214 = sst [smem:[#allocation20_spill]] %s1811_s6  ;;  %s1815_s9 = sshll.u32 %s210_s8, 6 }
  0x1f   : > { %s2215_s1 = sld [smem:[#allocation21_spill]]  ;;  %s212_s14 = scalar_lea.vmem [#allocation5], %s1815_s9 }
  0x20   : > { %s219_s15 = sshll.u32 %s212_s14, 4  ;;  %p1824_p9 = pnand %p2192_p8, %p81_p6  ;;  %s220_s15 = int_to_ptr.vmem [resolvable:$true] %s219_s15 }
  0x21   : > { %s2217_s2 = sld [smem:[#allocation22_spill]]  ;;  %s1833_s23 = scalar_lea.sflag [#allocation6], %s208_s7 }
  0x22   : > { %p2191_p10 = pneg %p1824_p9  ;;  %s1466_s11 = scalar_lea.vmem %s220_s15, 1024 }
  0x23   : > { %p1467_p11 = scmp.ne.s32.totalorder %s220_s15, %s1466_s11  ;;  %s1693_s12 = smov [#allocation5]  }
  0x24   : > { %s1471_s14 = sshll.u32 %s1693_s12, 4  ;;  %s1472_s14 = int_to_ptr.vmem [resolvable:$false] %s1471_s14 }
  0x25   : > { %s218_s13 = scalar_lea.hbm %s2215_s1, %s1191_s10  ;;  %p1469_p12 = pnand %p1467_p11, %p2191_p10 }
  0x26   : > { %s1473_s1 = scalar_lea.vmem %s1472_s14, 2048  ;;  %p1474_p3 = scmp.lt.s32.totalorder %s220_s15, %s1472_s14 }
  0x27   : > { %s1831_s8 = scalar_lea.hbm %s2217_s2, %s1191_s10  ;;  %p1470_p13 = pneg %p1469_p12 }
  0x28   : > { %p1475_p4 = scmp.lt.s32.totalorder %s1473_s1, %s1466_s11 }
  0x2a   : > { %p1476_p5 = por %p1475_p4, %p1474_p3 }
  0x2c   : > { %p1477_p6 = pnand %p1476_p5, %p1470_p13 }
  0x2e   : > { %1480 = shalt.err (!%p1477_p6)
}
  0x2f   : > { %s2193_s27 = smov 64   ;;  %s2195_s1 = smov 4  }
  0x30   : > { %1307 = dma.hbm_to_vmem [thread:$0]  (!%p1824_p9), %s218_s13, 1024, %s220_s15, %s1833_s23, %s2193_s27, %s2193_s27, %s2195_s1  }
  0x31   : > { %s233_s7 = scalar_lea.vmem [#allocation7], %s1815_s9  ;;  %p1135_p11 = scmp.ge.s32.totalorder %s1691_s25, 1 }
  0x32   : > { %s240_s10 = sshll.u32 %s233_s7, 4  ;;  %p248_p12 = scmp.lt.s32.totalorder %s1691_s25, 5  ;;  %s1904_s10 = int_to_ptr.vmem [resolvable:$true] %s240_s10 }
  0x33   : > { %s1123_s11 = sadd.s32 4294967294, %s1691_s25   ;;  %s39_s12 = sadd.s32 1, %s1687_s24 }
  0x34   : > { %p1849_p13 = pnand %p1135_p11, %p248_p12  ;;  %s2249_s12 = smov (!%p1785_p0, %s39_s12), %s1687_s24 }
  0x35   : > { %s46_s14 = sadd.s32 1, %s1671_s20  ;;  %p53_p3 = scmp.ne.s32.totalorder %s1671_s20, %s1667_s19 }
  0x36   : > { %p41_p4 = scmp.ge.s32.totalorder %s2249_s12, 2  ;;  %p59_p5 = scmp.ne.s32.totalorder %s1667_s19, %s1663_s18 }
  0x37   : > { %p1865_p6 = por %p54_p1, %p53_p3  ;;  %p135_p11 = scmp.eq.s32.totalorder %s1782_s26, 3 }
  0x38   : > { %s2251_s12 = smov (%p41_p4, %s2249_s12), 0  ;;  %p1874_p12 = por %p60_p2, %p59_p5 }
  0x39   : > { %p1878_p0 = por %p135_p11, %p53_p3  ;;  %s43_s15 = ssub.s32 %s1687_s24, %s2251_s12 }
  0x3a   : > { %p141_p1 = scmp.eq.s32.totalorder %s1123_s11, 3  ;;  %p44_p10 = scmp.eq.s32.totalorder %s43_s15, 0 }
  0x3b   : > { %s2221_s13 = scalar_select %p1878_p0, 1, 0 }
  0x3c   : > { %s187_s7 = sand.u32 1, %s1671_s20   ;;  %p1885_p8 = por %p141_p1, %p59_p5 }
  0x3d   : > { %s1890_s1 = scalar_select %p44_p10, %s1671_s20, %s46_s14  }
  0x3e   : > { %s2222_s27 = scalar_select %p1885_p8, 1, 0 }
  0x3f   : > { %s1126_s2 = sshll.u32 %s187_s7, 6  ;;  %s1190_s6 = sshll.u32 %s1687_s24, 10 }
  0x40   : > { %s197_s4 = scalar_lea.hbm %s2184_s0, %s1190_s6  ;;  %s191_s3 = scalar_lea.vmem [#allocation2], %s1126_s2 }
  0x41   : > { %s198_s22 = sshll.u32 %s191_s3, 4  ;;  %p2223_p2 = scmp.lt.s32.totalorder %s1691_s25, 4  ;;  %s199_s22 = int_to_ptr.vmem [resolvable:$true] %s198_s22 }
  0x42   : > { %s188_s14 = scalar_lea.sflag [#allocation3], %s187_s7  ;;  %s1494_s15 = scalar_lea.vmem %s199_s22, 1024 }
  0x43   : > { %p1900_p3 = pnand %p2223_p2, %p1865_p6  ;;  %p1495_p4 = scmp.ne.s32.totalorder %s199_s22, %s1494_s15 }
  0x44   : > { %s1696_s17 = smov [#allocation2]  }
  0x45   : > { %p1483_p10 = pneg %p1900_p3  ;;  %s1499_s2 = sshll.u32 %s1696_s17, 4  ;;  %s1500_s2 = int_to_ptr.vmem [resolvable:$false] %s1499_s2 }
  0x46   : > { %s1501_s3 = scalar_lea.vmem %s1500_s2, 2048  ;;  %p1502_p1 = scmp.lt.s32.totalorder %s199_s22, %s1500_s2 }
  0x47   : > { %p1497_p5 = pnand %p1495_p4, %p1483_p10  ;;  %p1503_p6 = scmp.lt.s32.totalorder %s1501_s3, %s1494_s15 }
  0x49   : > { %p1498_p11 = pneg %p1497_p5  ;;  %p1504_p2 = por %p1503_p6, %p1502_p1 }
  0x4b   : > { %p1505_p8 = pnand %p1504_p2, %p1498_p11 }
  0x4d   : > { %1508 = shalt.err (!%p1505_p8)
}
  0x4e   : > { %s2225_s18 = smov 4   ;;  %s2226_s6 = smov 64  }
  0x4f   : > { %1304 = dma.hbm_to_vmem [thread:$0]  (!%p1900_p3), %s197_s4, 1024, %s199_s22, %s188_s14, %s2226_s6, %s2226_s6, %s2225_s18  }
  0x50   : > { %s1522_s9 = scalar_lea.vmem %s1904_s10, 1024  ;;  %p2227_p4 = pneg %p1824_p9 }
  0x51   : > { %p1523_p10 = scmp.ne.s32.totalorder %s1904_s10, %s1522_s9  ;;  %s1697_s7 = smov [#allocation7]  }
  0x52   : > { %s1527_s15 = sshll.u32 %s1697_s7, 4  ;;  %s1528_s15 = int_to_ptr.vmem [resolvable:$false] %s1527_s15 }
  0x53   : > { %p1525_p5 = pnand %p1523_p10, %p2227_p4  ;;  %s1529_s17 = scalar_lea.vmem %s1528_s15, 2048 }
  0x54   : > { %p1530_p8 = scmp.lt.s32.totalorder %s1904_s10, %s1528_s15  ;;  %p1531_p11 = scmp.lt.s32.totalorder %s1529_s17, %s1522_s9 }
  0x55   : > { %p1526_p0 = pneg %p1525_p5 }
  0x56   : > { %p1532_p1 = por %p1531_p11, %p1530_p8 }
  0x58   : > { %p1533_p6 = pnand %p1532_p1, %p1526_p0 }
  0x5a   : > { %1536 = shalt.err (!%p1533_p6)
}
  0x5b   : > { %1310 = dma.hbm_to_vmem [thread:$0]  (!%p1824_p9), %s1831_s8, 1024, %s1904_s10, %s1833_s23, %s2226_s6, %s2226_s6, %s2225_s18  }
  0x5c   : > { %252 = sbr.rel (%p1849_p13) target bundleno = 633 (0x279), region = 32  ;;  %s1930_s4 = sand.u32 (!%p1849_p13), 1, %s1667_s19  }
  0x5d   : > { %s1136_s22 = sshll.u32 (!%p1849_p13), %s1930_s4, 6  ;;  %s255_s11 = scalar_lea.sflag (!%p1849_p13), [#allocation3], %s1930_s4 }
  0x5e   : > { %s1934_s14 = scalar_lea.vmem (!%p1849_p13), [#allocation2], %s1136_s22 }
  0x61   : > { %1634 = dma.done.wait (%p1874_p12), %s255_s11, 1024  }
  0x62   : > { %1636 = vsyncadd (%p1874_p12), %s255_s11, 4294966272  ;;  %s263_s23 = sand.u32 1, %s1782_s26   ;;  %s265_s30 = sand.u32 1, %s1655_s16  }
  0x63   : > { %s1137_s8 = sshll.u32 %s265_s30, 6  ;;  %s264_s10 = scalar_lea.sflag [#allocation6], %s263_s23 }
  0x64   : > { %s1942_s29 = scalar_lea.vmem [#allocation5], %s1137_s8 }
  0x65   : > { %1638 = dma.done.wait (%p1805_p7), %s264_s10, 2048  }
  0x66   : > { %1640 = vsyncadd (%p1805_p7), %s264_s10, 4294965248  ;;  %s1139_s2 = sshll.u32 %s1930_s4, 7  ;;  %s1949_s3 = scalar_lea.vmem [#allocation7], %s1137_s8 }
  0x67   : > { %s1951_s28 = scalar_lea.vmem [#allocation8], %s1139_s2  ;;  %s1953_s18 = scalar_lea.vmem [#allocation9], %s1139_s2 }
  0x68   : > { %p1141_p9 = scmp.ne.s32.totalorder %s1675_s21, 0 }
  0x6a   : > { %325 = sbr.rel (%p1141_p9) target bundleno = 128 (0x80), region = 48 }
  0x6f   : > { %v1698_v0 = vmov 0.0  }
  0x70   : > { %326 = vst [vmem:[%s1951_s28] sm:$0xff] %v1698_v0  ;;  %327 = vst [vmem:[%s1951_s28 + $0x8] sm:$0xff] %v1698_v0 }
  0x71   : > { %328 = vst [vmem:[%s1951_s28 + $0x10] sm:$0xff] %v1698_v0  ;;  %329 = vst [vmem:[%s1951_s28 + $0x18] sm:$0xff] %v1698_v0 }
  0x72   : > { %330 = vst [vmem:[%s1951_s28 + $0x20] sm:$0xff] %v1698_v0  ;;  %331 = vst [vmem:[%s1951_s28 + $0x28] sm:$0xff] %v1698_v0 }
  0x73   : > { %332 = vst [vmem:[%s1951_s28 + $0x30] sm:$0xff] %v1698_v0  ;;  %333 = vst [vmem:[%s1951_s28 + $0x38] sm:$0xff] %v1698_v0 }
  0x74   : > { %334 = vst [vmem:[%s1951_s28 + $0x40] sm:$0xff] %v1698_v0  ;;  %335 = vst [vmem:[%s1951_s28 + $0x48] sm:$0xff] %v1698_v0 }
  0x75   : > { %336 = vst [vmem:[%s1951_s28 + $0x50] sm:$0xff] %v1698_v0  ;;  %337 = vst [vmem:[%s1951_s28 + $0x58] sm:$0xff] %v1698_v0 }
  0x76   : > { %338 = vst [vmem:[%s1951_s28 + $0x60] sm:$0xff] %v1698_v0  ;;  %339 = vst [vmem:[%s1951_s28 + $0x68] sm:$0xff] %v1698_v0 }
  0x77   : > { %340 = vst [vmem:[%s1951_s28 + $0x70] sm:$0xff] %v1698_v0  ;;  %341 = vst [vmem:[%s1951_s28 + $0x78] sm:$0xff] %v1698_v0 }
  0x78   : > { %342 = vst [vmem:[%s1953_s18] sm:$0xff] %v1698_v0  ;;  %343 = vst [vmem:[%s1953_s18 + $0x8] sm:$0xff] %v1698_v0 }
  0x79   : > { %344 = vst [vmem:[%s1953_s18 + $0x10] sm:$0xff] %v1698_v0  ;;  %345 = vst [vmem:[%s1953_s18 + $0x18] sm:$0xff] %v1698_v0 }
  0x7a   : > { %346 = vst [vmem:[%s1953_s18 + $0x20] sm:$0xff] %v1698_v0  ;;  %347 = vst [vmem:[%s1953_s18 + $0x28] sm:$0xff] %v1698_v0 }
  0x7b   : > { %348 = vst [vmem:[%s1953_s18 + $0x30] sm:$0xff] %v1698_v0  ;;  %349 = vst [vmem:[%s1953_s18 + $0x38] sm:$0xff] %v1698_v0 }
  0x7c   : > { %350 = vst [vmem:[%s1953_s18 + $0x40] sm:$0xff] %v1698_v0  ;;  %351 = vst [vmem:[%s1953_s18 + $0x48] sm:$0xff] %v1698_v0 }
  0x7d   : > { %352 = vst [vmem:[%s1953_s18 + $0x50] sm:$0xff] %v1698_v0  ;;  %353 = vst [vmem:[%s1953_s18 + $0x58] sm:$0xff] %v1698_v0 }
  0x7e   : > { %354 = vst [vmem:[%s1953_s18 + $0x60] sm:$0xff] %v1698_v0  ;;  %355 = vst [vmem:[%s1953_s18 + $0x68] sm:$0xff] %v1698_v0 }
  0x7f   : > { %356 = vst [vmem:[%s1953_s18 + $0x70] sm:$0xff] %v1698_v0  ;;  %357 = vst [vmem:[%s1953_s18 + $0x78] sm:$0xff] %v1698_v0 }
  0x80 PF: > { %v1413_v1 = vld [vmem:[%s1942_s29 + $0x38] sm:$0xff]   ;;  %v1414_v2 = vld [vmem:[%s1942_s29 + $0x30] sm:$0xff]   ;;  %v1415_v3 = vld [vmem:[%s1942_s29 + $0x28] sm:$0xff]   ;;  %s2228_s21 = sld [smem:[#allocation17_spill]]  ;;  %s947_s15 = sshll.u32 %s1951_s28, 4  ;;  %s2053_s15 = int_to_ptr.vmem [resolvable:$true] %s947_s15 }
  0x81   : > { %1227 = vmatprep.subr.bf16.mxu0 %v1413_v1  ;;  %v1421_v4 = vld [vmem:[%s1934_s14] sm:$0xff]   ;;  %v1429_v6 = vld [vmem:[%s1949_s3 + $0x38] sm:$0xff]   ;;  %v1430_v7 = vld [vmem:[%s1949_s3 + $0x30] sm:$0xff]   ;;  %s2229_s9 = sld [smem:[#allocation23_spill]]  ;;  %s929_s17 = scalar_lea.sflag [#allocation4], %s1930_s4 }
  0x82   : > { %1228 = vmatpush3.bf16.xpose.msra.mxu0 %v1413_v1  ;;  %1243 = vmatprep.mubr.bf16.mxu0 %v1421_v4  ;;  %v1416_v5 = vld [vmem:[%s1942_s29 + $0x20] sm:$0xff]   ;;  %v1431_v8 = vld [vmem:[%s1949_s3 + $0x28] sm:$0xff]   ;;  %v1417_v9 = vld [vmem:[%s1942_s29 + $0x18] sm:$0xff]   ;;  %s1537_s22 = scalar_lea.vmem %s2053_s15, 2048  ;;  %p2230_p13 = scmp.ne.s32.totalorder %s2221_s13, 0 }
  0x83   : > { %1229 = vmatprep.subr.bf16.mxu0 %v1414_v2  ;;  %1259 = vmatprep.subr.bf16.mxu1 %v1429_v6  ;;  %v1432_v10 = vld [vmem:[%s1949_s3 + $0x20] sm:$0xff]   ;;  %v1433_v11 = vld [vmem:[%s1949_s3 + $0x18] sm:$0xff]   ;;  %v1418_v12 = vld [vmem:[%s1942_s29 + $0x10] sm:$0xff]   ;;  %p1538_p7 = scmp.ne.s32.totalorder %s2053_s15, %s1537_s22  ;;  %s1699_s11 = smov [#allocation8]  }
  0x84   : > { %1260 = vmatpush3.bf16.msra.mxu1 %v1429_v6  ;;  %v1434_v13 = vld [vmem:[%s1949_s3 + $0x10] sm:$0xff]   ;;  %v1419_v14 = vld [vmem:[%s1942_s29 + $0x8] sm:$0xff]   ;;  %v1420_v15 = vld [vmem:[%s1942_s29] sm:$0xff]  }
  0x85   : > { %1261 = vmatprep.subr.bf16.mxu1 %v1430_v7  ;;  %v1422_v16 = vld [vmem:[%s1934_s14 + $0x8] sm:$0xff]   ;;  %v1423_v17 = vld [vmem:[%s1934_s14 + $0x10] sm:$0xff]   ;;  %v1424_v18 = vld [vmem:[%s1934_s14 + $0x18] sm:$0xff]   ;;  %p1539_p12 = pnand %p1538_p7, %p2230_p13 }
  0x86   : > { %v1425_v19 = vld [vmem:[%s1934_s14 + $0x20] sm:$0xff]   ;;  %v1426_v20 = vld [vmem:[%s1934_s14 + $0x28] sm:$0xff]   ;;  %v1427_v21 = vld [vmem:[%s1934_s14 + $0x30] sm:$0xff]   ;;  %s1193_s26 = sshll.u32 %s2228_s21, 11 }
  0x87   : > { %v1428_v22 = vld [vmem:[%s1934_s14 + $0x38] sm:$0xff]   ;;  %v1435_v23 = vld [vmem:[%s1949_s3 + $0x8] sm:$0xff]   ;;  %v1436_v24 = vld [vmem:[%s1949_s3] sm:$0xff]   ;;  %s2050_s7 = scalar_lea.hbm %s2229_s9, %s1193_s26  ;;  %p1540_p0 = pneg %p1539_p12 }
  0x88   : > { %1262 = vmatpush3.bf16.msra.mxu1 %v1430_v7  ;;  %s1541_s14 = sshll.u32 %s1699_s11, 4  ;;  %s1542_s14 = int_to_ptr.vmem [resolvable:$false] %s1541_s14 }
  0x89   : > { %1263 = vmatprep.subr.bf16.mxu1 %v1431_v8  ;;  %s1543_s23 = scalar_lea.vmem %s1542_s14, 4096  ;;  %p1544_p3 = scmp.lt.s32.totalorder %s2053_s15, %s1542_s14 }
  0x8a   : > { %1230 = vmatpush3.bf16.xpose.msra.mxu0 %v1414_v2  ;;  %p1545_p2 = scmp.lt.s32.totalorder %s1543_s23, %s1537_s22 }
  0x8b   : > { %1231 = vmatprep.subr.bf16.mxu0 %v1415_v3 }
  0x8c   : > { %1264 = vmatpush3.bf16.msra.mxu1 %v1431_v8  ;;  %p1546_p10 = por %p1545_p2, %p1544_p3 }
  0x8d   : > { %1265 = vmatprep.subr.bf16.mxu1 %v1432_v10 }
  0x8e   : > { %p1547_p4 = pnand %p1546_p10, %p1540_p0 }
  0x90   : > { %1266 = vmatpush3.bf16.msra.mxu1 %v1432_v10 }
  0x91   : > { %1267 = vmatprep.subr.bf16.mxu1 %v1433_v11 }
  0x92   : > { %1232 = vmatpush3.bf16.xpose.msra.mxu0 %v1415_v3 }
  0x93   : > { %1233 = vmatprep.subr.bf16.mxu0 %v1416_v5 }
  0x94   : > { %1268 = vmatpush3.bf16.msra.mxu1 %v1433_v11 }
  0x95   : > { %1269 = vmatprep.subr.bf16.mxu1 %v1434_v13 }
  0x98   : > { %1270 = vmatpush3.bf16.msra.mxu1 %v1434_v13 }
  0x99   : > { %1271 = vmatprep.subr.bf16.mxu1 %v1435_v23 }
  0x9a   : > { %1234 = vmatpush3.bf16.xpose.msra.mxu0 %v1416_v5 }
  0x9b   : > { %1235 = vmatprep.subr.bf16.mxu0 %v1417_v9 }
  0x9c   : > { %1272 = vmatpush3.bf16.msra.mxu1 %v1435_v23 }
  0x9d   : > { %1273 = vmatprep.subr.bf16.mxu1 %v1436_v24 }
  0xa0   : > { %1274 = vmatpush3.bf16.msra.mxu1 %v1436_v24  ;;  %v663_v24 = vld [vmem:[%s1951_s28] sm:$0xff] }
  0xa2   : > { %1236 = vmatpush3.bf16.xpose.msra.mxu0 %v1417_v9 }
  0xa3   : > { %1237 = vmatprep.subr.bf16.mxu0 %v1418_v12 }
  0xaa   : > { %1238 = vmatpush3.bf16.xpose.msra.mxu0 %v1418_v12 }
  0xab   : > { %1239 = vmatprep.subr.bf16.mxu0 %v1419_v14 }
  0xb2   : > { %1240 = vmatpush3.bf16.xpose.msra.mxu0 %v1419_v14 }
  0xb3   : > { %1241 = vmatprep.subr.bf16.mxu0 %v1420_v15 }
  0xba   : > { %1242 = vmatpush3.bf16.xpose.msra.mxu0 %v1420_v15  ;;  %v665_v15 = vld [vmem:[%s1951_s28 + $0x10] sm:$0xff] }
  0xc1   : > { %1244 = vmatmul.mubr.bf16.vlgmr.msra.gmra.mxu0 %v1422_v16  ;;  %v666_v16 = vld [vmem:[%s1951_s28 + $0x18] sm:$0xff] }
  0xc2   : > { %1247 = vmatprep.mubr.bf16.mxu0 %v1423_v17 }
  0xc9   : > { %1248 = vmatmul.mubr.bf16.gmra.mxu0 %v1424_v18 }
  0xca   : > { %1251 = vmatprep.mubr.bf16.mxu0 %v1425_v19 }
  0xd1   : > { %1252 = vmatmul.mubr.bf16.gmra.mxu0 %v1426_v20 }
  0xd2   : > { %1255 = vmatprep.mubr.bf16.mxu0 %v1427_v21 }
  0xd9   : > { %1256 = vmatmul.mubr.bf16.gmra.mxu0 %v1428_v22 }
 0x181   : > { %v1245_v25 = vpop.f32.mrf.mxu0 }
 0x182   : > { %v1160_v27 = vadd.f32 -1.0, %v1245_v25 }
 0x183   : > { %v520_v26 = vpop.f32.mrf.mxu0 }
 0x184   : > { %v1158_v29 = vadd.f32 -1.0, %v520_v26  ;;  %v601_v32 = vmul.f32 2.0, %v1160_v27 }
 0x185   : > { %v1246_v28 = vpop.f32.mrf.mxu0 }
 0x186   : > { %v1161_v30 = vadd.f32 -1.0, %v1246_v28  ;;  %v728_v36 = vpack.c.bf16 %v1246_v28, %v1245_v25  ;;  %v599_v38 = vmul.f32 2.0, %v1158_v29  ;;  %v664_v25 = vld [vmem:[%s1951_s28 + $0x8] sm:$0xff] }
 0x187   : > { %v523_v31 = vpop.f32.mrf.mxu0 }
 0x188   : > { %v602_v33 = vmul.f32 2.0, %v1161_v30  ;;  %v1159_v34 = vadd.f32 -1.0, %v523_v31  ;;  %v727_v35 = vpack.c.bf16 %v523_v31, %v520_v26 }
 0x189   : > { %v1249_v37 = vpop.f32.mrf.mxu0 }
 0x18a   : > { %v616_v39 = vpack.c.bf16 %v602_v33, %v601_v32  ;;  %v600_v40 = vmul.f32 2.0, %v1159_v34  ;;  %1275 = vmatprep.mubr.bf16.mxu1 %v727_v35  ;;  %v1164_v41 = vadd.f32 -1.0, %v1249_v37 }
 0x18b   : > { %v536_v42 = vpop.f32.mrf.mxu0  ;;  %1276 = vmatmul.mubr.bf16.vlgmr.msra.gmra.mxu1 %v728_v36 }
 0x18c   : > { %v627_v43 = vmul.bf16 1069105081, %v616_v39  ;;  %v615_v44 = vpack.c.bf16 %v600_v40, %v599_v38  ;;  %v1162_v47 = vadd.f32 -1.0, %v536_v42  ;;  %v605_v49 = vmul.f32 2.0, %v1164_v41 }
 0x18d   : > { %v1250_v45 = vpop.f32.mrf.mxu0 }
 0x18e   : > { %1437 = vpow.bf16 %v627_v43  ;;  %v624_v46 = vmul.bf16 1069105081, %v615_v44  ;;  %v1165_v48 = vadd.f32 -1.0, %v1250_v45  ;;  %v730_v54 = vpack.c.bf16 %v1250_v45, %v1249_v37  ;;  %v669_v45 = vld [vmem:[%s1951_s28 + $0x30] sm:$0xff] }
 0x18f   : > { %v539_v50 = vpop.f32.mrf.mxu0  ;;  %v603_v56 = vmul.f32 2.0, %v1162_v47 }
 0x190   : > { %1439 = vpow.bf16 %v624_v46  ;;  %v606_v51 = vmul.f32 2.0, %v1165_v48  ;;  %v1163_v52 = vadd.f32 -1.0, %v539_v50  ;;  %v729_v53 = vpack.c.bf16 %v539_v50, %v536_v42  ;;  %v670_v46 = vld [vmem:[%s1951_s28 + $0x38] sm:$0xff] }
 0x191   : > { %v1253_v55 = vpop.f32.mrf.mxu0 }
 0x192   : > { %v618_v57 = vpack.c.bf16 %v606_v51, %v605_v49  ;;  %v604_v58 = vmul.f32 2.0, %v1163_v52  ;;  %1279 = vmatprep.mubr.bf16.mxu1 %v729_v53  ;;  %v1168_v59 = vadd.f32 -1.0, %v1253_v55  ;;  %v667_v52 = vld [vmem:[%s1951_s28 + $0x20] sm:$0xff]  ;;  %v668_v53 = vld [vmem:[%s1951_s28 + $0x28] sm:$0xff] }
 0x193   : > { %v552_v60 = vpop.f32.mrf.mxu0  ;;  %1280 = vmatmul.mubr.bf16.gmra.mxu1 %v730_v54 }
 0x194   : > { %v633_v61 = vmul.bf16 1069105081, %v618_v57  ;;  %v617_v62 = vpack.c.bf16 %v604_v58, %v603_v56  ;;  %v1166_v1 = vadd.f32 -1.0, %v552_v60  ;;  %v609_v3 = vmul.f32 2.0, %v1168_v59 }
 0x195   : > { %v1254_v63 = vpop.f32.mrf.mxu0 }
 0x196   : > { %1441 = vpow.bf16 %v633_v61  ;;  %v630_v0 = vmul.bf16 1069105081, %v617_v62  ;;  %v1169_v2 = vadd.f32 -1.0, %v1254_v63  ;;  %v732_v8 = vpack.c.bf16 %v1254_v63, %v1253_v55  ;;  %v673_v62 = vld [vmem:[%s1951_s28 + $0x50] sm:$0xff]  ;;  %v674_v63 = vld [vmem:[%s1951_s28 + $0x58] sm:$0xff] }
 0x197   : > { %v555_v4 = vpop.f32.mrf.mxu0  ;;  %v607_v10 = vmul.f32 2.0, %v1166_v1 }
 0x198   : > { %1443 = vpow.bf16 %v630_v0  ;;  %v610_v5 = vmul.f32 2.0, %v1169_v2  ;;  %v1167_v6 = vadd.f32 -1.0, %v555_v4  ;;  %v731_v7 = vpack.c.bf16 %v555_v4, %v552_v60  ;;  %v672_v4 = vld [vmem:[%s1951_s28 + $0x48] sm:$0xff] }
 0x199   : > { %v1257_v9 = vpop.f32.mrf.mxu0 }
 0x19a   : > { %v620_v11 = vpack.c.bf16 %v610_v5, %v609_v3  ;;  %v608_v12 = vmul.f32 2.0, %v1167_v6  ;;  %1283 = vmatprep.mubr.bf16.mxu1 %v731_v7  ;;  %v1172_v19 = vadd.f32 -1.0, %v1257_v9  ;;  %v671_v3 = vld [vmem:[%s1951_s28 + $0x40] sm:$0xff] }
 0x19b   : > { %v568_v13 = vpop.f32.mrf.mxu0  ;;  %1284 = vmatmul.mubr.bf16.gmra.mxu1 %v732_v8 }
 0x19c   : > { %v1438_v14 = vpop.eup %1437  ;;  %v639_v17 = vmul.bf16 1069105081, %v620_v11  ;;  %v619_v18 = vpack.c.bf16 %v608_v12, %v607_v10  ;;  %v1170_v27 = vadd.f32 -1.0, %v568_v13  ;;  %v613_v34 = vmul.f32 2.0, %v1172_v19  ;;  %v677_v12 = vld [vmem:[%s1951_s28 + $0x70] sm:$0xff] }
 0x19d   : > { %v649_v20 = vunpack.c.l.bf16 %v1438_v14  ;;  %v650_v21 = vunpack.c.h.bf16 %v1438_v14  ;;  %v1258_v22 = vpop.f32.mrf.mxu0 }
 0x19e   : > { %v1440_v23 = vpop.eup %1439  ;;  %1445 = vpow.bf16 %v639_v17  ;;  %v636_v26 = vmul.bf16 1069105081, %v619_v18  ;;  %v1173_v28 = vadd.f32 -1.0, %v1258_v22  ;;  %v611_v40 = vmul.f32 2.0, %v1170_v27  ;;  %v675_v17 = vld [vmem:[%s1951_s28 + $0x60] sm:$0xff]  ;;  %v676_v18 = vld [vmem:[%s1951_s28 + $0x68] sm:$0xff] }
 0x19f   : > { %v681_v29 = vadd.f32 %v665_v15, %v649_v20  ;;  %v682_v30 = vadd.f32 %v666_v16, %v650_v21  ;;  %v647_v31 = vunpack.c.l.bf16 %v1440_v23  ;;  %v648_v32 = vunpack.c.h.bf16 %v1440_v23  ;;  %v571_v33 = vpop.f32.mrf.mxu0 }
 0x1a0   : > { %1447 = vpow.bf16 %v636_v26  ;;  %v614_v35 = vmul.f32 2.0, %v1173_v28  ;;  %v1171_v36 = vadd.f32 -1.0, %v571_v33  ;;  %v733_v39 = vpack.c.bf16 %v571_v33, %v568_v13  ;;  %v678_v13 = vld [vmem:[%s1951_s28 + $0x78] sm:$0xff] }
 0x1a1   : > { %697 = vst [vmem:[%s1951_s28 + $0x10] sm:$0xff] %v681_v29  ;;  %698 = vst [vmem:[%s1951_s28 + $0x18] sm:$0xff] %v682_v30  ;;  %v679_v37 = vadd.f32 %v663_v24, %v647_v31  ;;  %v680_v38 = vadd.f32 %v664_v25, %v648_v32  ;;  %v734_v42 = vpack.c.bf16 %v1258_v22, %v1257_v9 }
 0x1a2   : > { %v622_v41 = vpack.c.bf16 %v614_v35, %v613_v34  ;;  %v612_v43 = vmul.f32 2.0, %v1171_v36  ;;  %1287 = vmatprep.mubr.bf16.mxu1 %v733_v39 }
 0x1a3   : > { %695 = vst [vmem:[%s1951_s28] sm:$0xff] %v679_v37  ;;  %696 = vst [vmem:[%s1951_s28 + $0x8] sm:$0xff] %v680_v38  ;;  %1288 = vmatmul.mubr.bf16.gmra.mxu1 %v734_v42 }
 0x1a4   : > { %v1442_v44 = vpop.eup %1441  ;;  %v645_v47 = vmul.bf16 1069105081, %v622_v41  ;;  %v621_v48 = vpack.c.bf16 %v612_v43, %v611_v40 }
 0x1a5   : > { %v653_v49 = vunpack.c.l.bf16 %v1442_v44  ;;  %v654_v50 = vunpack.c.h.bf16 %v1442_v44 }
 0x1a6   : > { %v1444_v51 = vpop.eup %1443  ;;  %1449 = vpow.bf16 %v645_v47  ;;  %v642_v54 = vmul.bf16 1069105081, %v621_v48 }
 0x1a7   : > { %v685_v55 = vadd.f32 %v669_v45, %v653_v49  ;;  %v686_v56 = vadd.f32 %v670_v46, %v654_v50  ;;  %v651_v57 = vunpack.c.l.bf16 %v1444_v51  ;;  %v652_v58 = vunpack.c.h.bf16 %v1444_v51 }
 0x1a8   : > { %1451 = vpow.bf16 %v642_v54 }
 0x1a9   : > { %701 = vst [vmem:[%s1951_s28 + $0x30] sm:$0xff] %v685_v55  ;;  %702 = vst [vmem:[%s1951_s28 + $0x38] sm:$0xff] %v686_v56  ;;  %v683_v59 = vadd.f32 %v667_v52, %v651_v57  ;;  %v684_v60 = vadd.f32 %v668_v53, %v652_v58 }
 0x1ab   : > { %699 = vst [vmem:[%s1951_s28 + $0x20] sm:$0xff] %v683_v59  ;;  %700 = vst [vmem:[%s1951_s28 + $0x28] sm:$0xff] %v684_v60 }
 0x1ac   : > { %v1446_v61 = vpop.eup %1445 }
 0x1ad   : > { %v657_v0 = vunpack.c.l.bf16 %v1446_v61  ;;  %v658_v1 = vunpack.c.h.bf16 %v1446_v61 }
 0x1ae   : > { %v1448_v2 = vpop.eup %1447 }
 0x1af   : > { %v689_v5 = vadd.f32 %v673_v62, %v657_v0  ;;  %v690_v6 = vadd.f32 %v674_v63, %v658_v1  ;;  %v655_v7 = vunpack.c.l.bf16 %v1448_v2  ;;  %v656_v8 = vunpack.c.h.bf16 %v1448_v2 }
 0x1b1   : > { %705 = vst [vmem:[%s1951_s28 + $0x50] sm:$0xff] %v689_v5  ;;  %706 = vst [vmem:[%s1951_s28 + $0x58] sm:$0xff] %v690_v6  ;;  %v687_v9 = vadd.f32 %v671_v3, %v655_v7  ;;  %v688_v10 = vadd.f32 %v672_v4, %v656_v8 }
 0x1b3   : > { %703 = vst [vmem:[%s1951_s28 + $0x40] sm:$0xff] %v687_v9  ;;  %704 = vst [vmem:[%s1951_s28 + $0x48] sm:$0xff] %v688_v10 }
 0x1b4   : > { %v1450_v11 = vpop.eup %1449 }
 0x1b5   : > { %v661_v14 = vunpack.c.l.bf16 %v1450_v11  ;;  %v662_v15 = vunpack.c.h.bf16 %v1450_v11 }
 0x1b6   : > { %v1452_v16 = vpop.eup %1451 }
 0x1b7   : > { %v693_v19 = vadd.f32 %v677_v12, %v661_v14  ;;  %v694_v20 = vadd.f32 %v678_v13, %v662_v15  ;;  %v659_v21 = vunpack.c.l.bf16 %v1452_v16  ;;  %v660_v22 = vunpack.c.h.bf16 %v1452_v16 }
 0x1b9   : > { %709 = vst [vmem:[%s1951_s28 + $0x70] sm:$0xff] %v693_v19  ;;  %710 = vst [vmem:[%s1951_s28 + $0x78] sm:$0xff] %v694_v20  ;;  %v691_v23 = vadd.f32 %v675_v17, %v659_v21  ;;  %v692_v24 = vadd.f32 %v676_v18, %v660_v22 }
 0x1bb   : > { %707 = vst [vmem:[%s1951_s28 + $0x60] sm:$0xff] %v691_v23  ;;  %708 = vst [vmem:[%s1951_s28 + $0x68] sm:$0xff] %v692_v24 }
 0x1bc   : > { %1550 = shalt.err (!%p1547_p4)
}
 0x1bd   : > { %s1551_s30 = scalar_lea.hbm %s2050_s7, 2048  ;;  %s1555_s29 = scalar_lea.hbm %s2229_s9, 4096 }
 0x1be   : > { %p1552_p5 = scmp.ne.s32.totalorder %s2050_s7, %s1551_s30  ;;  %p1556_p1 = scmp.lt.s32.totalorder %s2050_s7, %s2229_s9 }
 0x1bf   : > { %p1557_p6 = scmp.lt.s32.totalorder %s1555_s29, %s1551_s30 }
 0x1c0   : > { %p1553_p8 = pnand %p1552_p5, %p2230_p13 }
 0x1c1   : > { %p1558_p9 = por %p1557_p6, %p1556_p1 }
 0x1c2   : > { %p1554_p11 = pneg %p1553_p8 }
 0x1c4   : > { %p1559_p7 = pnand %p1558_p9, %p1554_p11 }
 0x1c6   : > { %1562 = shalt.err (!%p1559_p7)
}
 0x1c7   : > { %s1700_s28 = smov 128   ;;  %s1701_s5 = smov 8   ;;  %v713_v25 = vld [vmem:[%s1953_s18 + $0x10] sm:$0xff]  ;;  %v711_v27 = vld [vmem:[%s1953_s18] sm:$0xff]  ;;  %v714_v30 = vld [vmem:[%s1953_s18 + $0x18] sm:$0xff] }
 0x1c8   : > { %1297 = dma.vmem_to_hbm [thread:$0]  (%p2230_p13), %s2053_s15, 2048, %s2050_s7, %s929_s17, %s1700_s28, %s1700_s28, %s1701_s5  }
 0x1c9   : > { %v712_v33 = vld [vmem:[%s1953_s18 + $0x8] sm:$0xff]  ;;  %v717_v36 = vld [vmem:[%s1953_s18 + $0x30] sm:$0xff]  ;;  %v715_v39 = vld [vmem:[%s1953_s18 + $0x20] sm:$0xff]  ;;  %s963_s6 = sshll.u32 %s1953_s18, 4  ;;  %s2231_s17 = sld [smem:[#allocation24_spill]]  ;;  %s2120_s6 = int_to_ptr.vmem [resolvable:$true] %s963_s6 }
 0x1ca   : > { %v718_v42 = vld [vmem:[%s1953_s18 + $0x38] sm:$0xff]  ;;  %v716_v45 = vld [vmem:[%s1953_s18 + $0x28] sm:$0xff]  ;;  %v721_v48 = vld [vmem:[%s1953_s18 + $0x50] sm:$0xff]  ;;  %s934_s14 = scalar_lea.sflag [#allocation10], %s1930_s4  ;;  %s1563_s23 = scalar_lea.vmem %s2120_s6, 2048 }
 0x1cb   : > { %v719_v51 = vld [vmem:[%s1953_s18 + $0x40] sm:$0xff]  ;;  %v722_v54 = vld [vmem:[%s1953_s18 + $0x58] sm:$0xff]  ;;  %v720_v57 = vld [vmem:[%s1953_s18 + $0x48] sm:$0xff]  ;;  %p1564_p12 = scmp.ne.s32.totalorder %s2120_s6, %s1563_s23  ;;  %s1702_s30 = smov [#allocation9]  }
 0x1cc   : > { %v725_v61 = vld [vmem:[%s1953_s18 + $0x70] sm:$0xff]  ;;  %v723_v63 = vld [vmem:[%s1953_s18 + $0x60] sm:$0xff]  ;;  %v726_v2 = vld [vmem:[%s1953_s18 + $0x78] sm:$0xff]  ;;  %s1567_s8 = sshll.u32 %s1702_s30, 4  ;;  %s1568_s8 = int_to_ptr.vmem [resolvable:$false] %s1567_s8 }
 0x1cd   : > { %v724_v5 = vld [vmem:[%s1953_s18 + $0x68] sm:$0xff]  ;;  %p1565_p0 = pnand %p1564_p12, %p2230_p13  ;;  %s1569_s21 = scalar_lea.vmem %s1568_s8, 4096 }
 0x1ce   : > { %p1570_p2 = scmp.lt.s32.totalorder %s2120_s6, %s1568_s8  ;;  %p1571_p10 = scmp.lt.s32.totalorder %s1569_s21, %s1563_s23 }
 0x1cf   : > { %s2232_s11 = smov %s2231_s17  ;;  %s2118_s22 = scalar_lea.hbm %s2231_s17, %s1193_s26 }
 0x1d0   : > { %p1566_p3 = pneg %p1565_p0  ;;  %p1572_p4 = por %p1571_p10, %p1570_p2 }
 0x1d2   : > { %p1573_p5 = pnand %p1572_p4, %p1566_p3 }
 0x24b   : > { %v1277_v26 = vpop.f32.mrf.mxu1 }
 0x24c   : > { %v898_v28 = vadd.f32 %v1277_v26, %v713_v25 }
 0x24d   : > { %v833_v29 = vpop.f32.mrf.mxu1 }
 0x24e   : > { %914 = vst [vmem:[%s1953_s18 + $0x10] sm:$0xff] %v898_v28  ;;  %v896_v31 = vadd.f32 %v833_v29, %v711_v27 }
 0x24f   : > { %v1278_v32 = vpop.f32.mrf.mxu1 }
 0x250   : > { %912 = vst [vmem:[%s1953_s18] sm:$0xff] %v896_v31  ;;  %v899_v34 = vadd.f32 %v1278_v32, %v714_v30 }
 0x251   : > { %v836_v35 = vpop.f32.mrf.mxu1 }
 0x252   : > { %915 = vst [vmem:[%s1953_s18 + $0x18] sm:$0xff] %v899_v34  ;;  %v897_v37 = vadd.f32 %v836_v35, %v712_v33 }
 0x253   : > { %v1281_v38 = vpop.f32.mrf.mxu1 }
 0x254   : > { %913 = vst [vmem:[%s1953_s18 + $0x8] sm:$0xff] %v897_v37  ;;  %v902_v40 = vadd.f32 %v1281_v38, %v717_v36 }
 0x255   : > { %v849_v41 = vpop.f32.mrf.mxu1 }
 0x256   : > { %918 = vst [vmem:[%s1953_s18 + $0x30] sm:$0xff] %v902_v40  ;;  %v900_v43 = vadd.f32 %v849_v41, %v715_v39 }
 0x257   : > { %v1282_v44 = vpop.f32.mrf.mxu1 }
 0x258   : > { %916 = vst [vmem:[%s1953_s18 + $0x20] sm:$0xff] %v900_v43  ;;  %v903_v46 = vadd.f32 %v1282_v44, %v718_v42 }
 0x259   : > { %v852_v47 = vpop.f32.mrf.mxu1 }
 0x25a   : > { %919 = vst [vmem:[%s1953_s18 + $0x38] sm:$0xff] %v903_v46  ;;  %v901_v49 = vadd.f32 %v852_v47, %v716_v45 }
 0x25b   : > { %v1285_v50 = vpop.f32.mrf.mxu1 }
 0x25c   : > { %917 = vst [vmem:[%s1953_s18 + $0x28] sm:$0xff] %v901_v49  ;;  %v906_v52 = vadd.f32 %v1285_v50, %v721_v48 }
 0x25d   : > { %v865_v53 = vpop.f32.mrf.mxu1 }
 0x25e   : > { %922 = vst [vmem:[%s1953_s18 + $0x50] sm:$0xff] %v906_v52  ;;  %v904_v55 = vadd.f32 %v865_v53, %v719_v51 }
 0x25f   : > { %v1286_v56 = vpop.f32.mrf.mxu1 }
 0x260   : > { %920 = vst [vmem:[%s1953_s18 + $0x40] sm:$0xff] %v904_v55  ;;  %v907_v58 = vadd.f32 %v1286_v56, %v722_v54 }
 0x261   : > { %v868_v59 = vpop.f32.mrf.mxu1 }
 0x262   : > { %923 = vst [vmem:[%s1953_s18 + $0x58] sm:$0xff] %v907_v58  ;;  %v905_v60 = vadd.f32 %v868_v59, %v720_v57 }
 0x263   : > { %v1289_v62 = vpop.f32.mrf.mxu1 }
 0x264   : > { %921 = vst [vmem:[%s1953_s18 + $0x48] sm:$0xff] %v905_v60  ;;  %v910_v0 = vadd.f32 %v1289_v62, %v725_v61 }
 0x265   : > { %v881_v1 = vpop.f32.mrf.mxu1 }
 0x266   : > { %926 = vst [vmem:[%s1953_s18 + $0x70] sm:$0xff] %v910_v0  ;;  %v908_v3 = vadd.f32 %v881_v1, %v723_v63 }
 0x267   : > { %v1290_v4 = vpop.f32.mrf.mxu1 }
 0x268   : > { %924 = vst [vmem:[%s1953_s18 + $0x60] sm:$0xff] %v908_v3  ;;  %v911_v6 = vadd.f32 %v1290_v4, %v726_v2 }
 0x269   : > { %v884_v7 = vpop.f32.mrf.mxu1 }
 0x26a   : > { %927 = vst [vmem:[%s1953_s18 + $0x78] sm:$0xff] %v911_v6  ;;  %v909_v8 = vadd.f32 %v884_v7, %v724_v5 }
 0x26c   : > { %925 = vst [vmem:[%s1953_s18 + $0x68] sm:$0xff] %v909_v8 }
 0x26d   : > { %1576 = shalt.err (!%p1573_p5)
}
 0x26e   : > { %s1577_s18 = scalar_lea.hbm %s2118_s22, 2048  ;;  %s1581_s10 = scalar_lea.hbm %s2232_s11, 4096 }
 0x26f   : > { %p1578_p8 = scmp.ne.s32.totalorder %s2118_s22, %s1577_s18  ;;  %p1582_p6 = scmp.lt.s32.totalorder %s2118_s22, %s2232_s11 }
 0x270   : > { %p1583_p9 = scmp.lt.s32.totalorder %s1581_s10, %s1577_s18 }
 0x271   : > { %p1579_p11 = pnand %p1578_p8, %p2230_p13 }
 0x272   : > { %p1584_p7 = por %p1583_p9, %p1582_p6 }
 0x273   : > { %p1580_p1 = pneg %p1579_p11 }
 0x275   : > { %p1585_p12 = pnand %p1584_p7, %p1580_p1 }
 0x277   : > { %1588 = shalt.err (!%p1585_p12)
}
 0x278   : > { %1298 = dma.vmem_to_hbm [thread:$0]  (%p2230_p13), %s2120_s6, 2048, %s2118_s22, %s934_s14, %s1700_s28, %s1700_s28, %s1701_s5  }
 0x279 PF: > { %s2233_s3 = sld [smem:[#allocation16_spill]]  ;;  %p1319_p0 = scmp.ge.s32.totalorder %s1691_s25, 2 }
 0x27a   : > { %p2234_p3 = scmp.ne.s32.totalorder %s2222_s27, 0 }
 0x27c   : > { %p1312_p2 = pnand %p1319_p0, %p2234_p3 }
 0x27e   : > { %p1313_p10 = pneg %p1312_p2 }
 0x27f   : > { %s978_s7 = sand.u32 1, %s2233_s3  }
 0x280   : > { %s979_s15 = scalar_lea.sflag [#allocation4], %s978_s7 }
 0x281   : > { %1642 = dma.done.wait (%p1313_p10), %s979_s15, 2048  }
 0x282   : > { %1644 = vsyncadd (%p1313_p10), %s979_s15, 4294965248  ;;  %s988_s17 = scalar_lea.sflag [#allocation10], %s978_s7 }
 0x283   : > { %1646 = dma.done.wait (%p1313_p10), %s988_s17, 2048  }
 0x284   : > { %1648 = vsyncadd (%p1313_p10), %s988_s17, 4294965248  ;;  %s27_s25 = sadd.s32 1, %s1691_s25   ;;  %s2235_s13 = sld [smem:[#allocation15_spill]] }
 0x285   : > { %p24_p4 = scmp.ge.s32.totalorder %s27_s25, 6   ;;  %s2236_s17 = sld [smem:[#allocation20_spill]] }
 0x286   : > { %s2237_s21 = sld [smem:[#allocation18_spill]]  ;;  %s2239_s15 = smov %s1655_s16 }
 0x287   : > { %s2238_s23 = sld [smem:[#allocation19_spill]]  ;;  %s2241_s18 = smov %s1667_s19 }
 0x288   : > { %s2242_s19 = smov %s1671_s20  ;;  %s2243_s20 = smov %s1890_s1 }
 0x289   : > { %s2244_s22 = smov %s1687_s24  ;;  %s2245_s24 = smov %s2251_s12 }
 0x28a   : > { %s2240_s16 = smov %s2235_s13  ;;  %26 = sbr.rel (!%p24_p4) target bundleno = 18 (0x12), region = 122 }
 0x28f   :  { %993 = vsyncpa [#allocation3], 1 }
 0x290   :  { %995 = vsyncpa [#allocation3 + $0x1], 1 }
 0x291   :  { %996 = vsyncpa [#allocation6], 1 }
 0x292   :  { %998 = vsyncpa [#allocation6 + $0x1], 1 }
 0x293   :  { %999 = vsyncpa [#allocation4], 1 }
 0x294   :  { %1001 = vsyncpa [#allocation4 + $0x1], 1 }
 0x295   :  { %1002 = vsyncpa [#allocation10], 1 }
 0x296   :  { %1004 = vsyncpa [#allocation10 + $0x1], 1 }

</bundles_post_ra>
